<compile_context>
chip_gen: v7x
topology: tpu7x:2x2x1
jax: 0.10.0
libtpu: 0.0.40
codegen_flags: <defaults>
</compile_context>

<pallas_src>
import math
import functools

import jax
import jax.numpy as jnp
from jax.experimental import pallas as pl
from jax.experimental.pallas import tpu as pltpu

NEG_INF = -1e20    # neginf(torch.float32)
PAD_NEG = -2e20    # strictly below NEG_INF: padded keys vanish even in fully-masked rows

_LANE = 128
_VMEM_BUDGET = 20 * 1024 * 1024   # target per-step working set (incl. double buffering)
_VMEM_LIMIT = 32 * 1024 * 1024    # explicit scoped-VMEM request (safe on v5e/v6e/v7x)


def _attn_kernel(*refs, scale, residual, has_mask, has_values, return_weights, lk_valid):
    it = iter(refs)
    q_ref = next(it)                               # (TB, Lq, D)
    k_ref = next(it)                               # (TB, Lkp, D)
    v_ref = next(it) if has_values else k_ref      # reuse K block when values is ys
    mask_ref = next(it) if has_mask else None      # (TB, 1, Lkp) int32
    out_ref = next(it)                             # (TB, Lq, D)
    w_ref = next(it) if return_weights else None   # (TB, Lq, Lkp)

    q = q_ref[...]
    if scale != 1.0:
        # scale the (Lq, D) operand instead of the (Lq, Lk) score matrix
        q = q * scale

    # scores (TB, Lq, Lkp) with f32 accumulation on the MXU
    s = jnp.einsum('bqd,bkd->bqk', q, k_ref[...],
                   preferred_element_type=jnp.float32)

    if has_mask:
        s = jnp.where(mask_ref[...] == 0, NEG_INF, s)

    lk_pad = s.shape[-1]
    if lk_valid < lk_pad:
        # mask out lane-padding of the key axis (below NEG_INF so a fully-masked row
        # still normalizes over the *real* keys exactly like torch)
        kidx = jax.lax.broadcasted_iota(jnp.int32, s.shape, 2)
        s = jnp.where(kidx < lk_valid, s, PAD_NEG)

    # softmax over keys, computed in float32 (F.softmax(..., dtype=torch.float))
    s_max = jnp.max(s, axis=-1, keepdims=True)
    e = jnp.exp(s - s_max)
    denom = jnp.sum(e, axis=-1, keepdims=True)     # (TB, Lq, 1)

    v = v_ref[...]

    if return_weights:
        # exact normalization (weights are returned and must match torch closely)
        p = (e * pl.reciprocal(denom, approx=False)).astype(w_ref.dtype)  # type_as(l1)
        out = jnp.einsum('bqk,bkd->bqd', p, v, preferred_element_type=jnp.float32)
        w_ref[...] = p
    else:
        # deferred normalization: skips the big weight writeback and the (Lq,Lk) divide
        out = jnp.einsum('bqk,bkd->bqd', e.astype(v.dtype), v,
                         preferred_element_type=jnp.float32)
        out = out * pl.reciprocal(denom, approx=True)

    if residual:
        out = out + q_ref[...].astype(jnp.float32)  # residual adds the *unscaled* xs

    out_ref[...] = out.astype(out_ref.dtype)


def _round_up(n, m):
    return ((n + m - 1) // m) * m


def _largest_divisor_leq(n, cap):
    cap = max(1, min(n, cap))
    for t in range(cap, 0, -1):
        if n % t == 0:
            return t
    return 1


def _choose_block_batch(B, Lq, Lkp, D, itemsize, has_values, has_mask, return_weights):
    """Largest per-step batch block that keeps the pipelined working set in VMEM."""
    per_row = Lq * D * itemsize + Lkp * D * itemsize
    if has_values:
        per_row += Lkp * D * itemsize
    if has_mask:
        per_row += Lkp * 4
    per_row += Lq * D * itemsize
    if return_weights:
        per_row += Lq * Lkp * itemsize
    per_row *= 2                        # double-buffered input/output blocks
    per_row += 3 * Lq * Lkp * 4         # f32 score / exp intermediates headroom
    fit = max(1, _VMEM_BUDGET // max(per_row, 1))
    if B >= 2:
        fit = min(fit, max(1, B // 2))  # keep >=2 grid steps (megacore / pipelining)
    return _largest_divisor_leq(B, fit)


def basic_attention(xs, ys, mask_ys=None, values=None,
                    attn='basic', residual=False, get_weights=True):
    """Pallas implementation of BasicAttention.forward (dim=2 dot-product path)."""
    if attn == 'cosine':
        # TODO(synk): cosine / dim=1 branch not implemented.
        raise NotImplementedError("attn='cosine' is not implemented in the Pallas kernel")

    B, Lq, D = xs.shape
    Lk = ys.shape[1]

    has_values = (values is not None) and (values is not ys)
    has_mask = mask_ys is not None
    scale = (1.0 / math.sqrt(D)) if attn == 'sqrt' else 1.0

    # pad the key axis to a lane multiple (lane-dense score tile / weight store)
    Lkp = _round_up(Lk, _LANE)
    ys_p = ys if Lkp == Lk else jnp.pad(ys, ((0, 0), (0, Lkp - Lk), (0, 0)))

    ops = [xs, ys_p]
    if has_values:
        v_p = values if Lkp == Lk else jnp.pad(values, ((0, 0), (0, Lkp - Lk), (0, 0)))
        ops.append(v_p)
    if has_mask:
        # guard against float masks: keep = (mask != 0), computed in the original dtype
        keep = (mask_ys != 0).astype(jnp.int32).reshape(B, 1, Lk)
        if Lkp != Lk:
            keep = jnp.pad(keep, ((0, 0), (0, 0), (0, Lkp - Lk)))
        ops.append(keep)

    itemsize = jnp.dtype(xs.dtype).itemsize
    tb = _choose_block_batch(B, Lq, Lkp, D, itemsize, has_values, has_mask, get_weights)
    grid = (B // tb,)

    in_specs = [pl.BlockSpec((tb, Lq, D), lambda b: (b, 0, 0)),
                pl.BlockSpec((tb, Lkp, D), lambda b: (b, 0, 0))]
    if has_values:
        in_specs.append(pl.BlockSpec((tb, Lkp, D), lambda b: (b, 0, 0)))
    if has_mask:
        in_specs.append(pl.BlockSpec((tb, 1, Lkp), lambda b: (b, 0, 0)))

    out_dtype = xs.dtype
    if get_weights:
        out_shape = (jax.ShapeDtypeStruct((B, Lq, D), out_dtype),
                     jax.ShapeDtypeStruct((B, Lq, Lkp), out_dtype))
        out_specs = (pl.BlockSpec((tb, Lq, D), lambda b: (b, 0, 0)),
                     pl.BlockSpec((tb, Lq, Lkp), lambda b: (b, 0, 0)))
    else:
        out_shape = jax.ShapeDtypeStruct((B, Lq, D), out_dtype)
        out_specs = pl.BlockSpec((tb, Lq, D), lambda b: (b, 0, 0))

    kernel = functools.partial(_attn_kernel, scale=scale, residual=residual,
                               has_mask=has_mask, has_values=has_values,
                               return_weights=get_weights, lk_valid=Lk)

    result = pl.pallas_call(
        kernel,
        out_shape=out_shape,
        grid=grid,
        in_specs=in_specs,
        out_specs=out_specs,
        compiler_params=pltpu.CompilerParams(
            dimension_semantics=("parallel",),
            vmem_limit_bytes=_VMEM_LIMIT),
    )(*ops)

    if get_weights:
        lhs_emb, l2 = result
        if Lkp != Lk:
            l2 = l2[:, :, :Lk]
    else:
        lhs_emb = result

    # torch: lhs_emb.squeeze(dim - 1) with dim=2 -> squeeze(1): only when x_len == 1
    if Lq == 1:
        lhs_emb = jnp.squeeze(lhs_emb, axis=1)

    if get_weights:
        return lhs_emb, l2
    return lhs_emb


def _reference(xs, ys, mask_ys, values, attn, residual):
    scale = (1.0 / math.sqrt(xs.shape[-1])) if attn == 'sqrt' else 1.0
    s = jnp.einsum('bqd,bkd->bqk', xs, ys) * scale
    if mask_ys is not None:
        s = jnp.where((mask_ys == 0)[:, None, :], NEG_INF, s)
    p = jax.nn.softmax(s.astype(jnp.float32), axis=-1).astype(xs.dtype)
    out = jnp.einsum('bqk,bkd->bqd', p, values)
    if residual:
        out = out + xs
    return out, p


if __name__ == "__main__":
    key = jax.random.PRNGKey(0)
    k1, k2, k3 = jax.random.split(key, 3)

    B, Lq, Lk, D = 2, 8, 8, 32
    xs = jax.random.normal(k1, (B, Lq, D), dtype=jnp.float32)
    ys = jax.random.normal(k2, (B, Lk, D), dtype=jnp.float32)
    vs = jax.random.normal(k3, (B, Lk, D), dtype=jnp.float32)
    # mask: 1 = keep, 0 = mask out (last two keys of batch 0 are masked)
    mask_ys = jnp.ones((B, Lk), jnp.int32).at[0, -2:].set(0)

    # 1) sqrt attention, shared K/V, mask, weights returned
    emb1, w1 = basic_attention(xs, ys, mask_ys=mask_ys, attn='sqrt', get_weights=True)
    ref1, refw1 = _reference(xs, ys, mask_ys, ys, 'sqrt', False)

    # 2) basic attention, distinct values, no mask, residual, weights returned
    emb2, w2 = basic_attention(xs, ys, values=vs, attn='basic',
                               residual=True, get_weights=True)
    ref2, refw2 = _reference(xs, ys, None, vs, 'basic', True)

    # 3) no-weights scoring path (deferred normalization + approx reciprocal)
    emb3 = basic_attention(xs, ys, mask_ys=mask_ys, attn='sqrt', get_weights=False)
    ref3, _ = _reference(xs, ys, mask_ys, ys, 'sqrt', False)

    # 4) single-query path (squeeze on x_len == 1)
    xs1 = xs[:, :1, :]
    emb4, w4 = basic_attention(xs1, ys, mask_ys=mask_ys, attn='sqrt', get_weights=True)
    ref4, refw4 = _reference(xs1, ys, mask_ys, ys, 'sqrt', False)

    jax.block_until_ready((emb1, w1, emb2, w2, emb3, emb4, w4))

    assert jnp.allclose(emb1, ref1, rtol=1e-4, atol=1e-4)
    assert jnp.allclose(w1, refw1, rtol=1e-4, atol=1e-4)
    assert jnp.allclose(emb2, ref2, rtol=1e-4, atol=1e-4)
    assert jnp.allclose(w2, refw2, rtol=1e-4, atol=1e-4)
    assert jnp.allclose(emb3, ref3, rtol=2e-2, atol=2e-2)   # approx-reciprocal path
    assert emb4.shape == (B, D)
    assert jnp.allclose(emb4, jnp.squeeze(ref4, axis=1), rtol=1e-4, atol=1e-4)
    assert jnp.allclose(w4, refw4, rtol=1e-4, atol=1e-4)

    print("KERNEL_OK")
</pallas_src>

<mosaic_0001>
module attributes {stable_mosaic.version = 11 : i64} {
  func.func @_attn_kernel(%arg0: i32, %arg1: memref<1x8x32xf32, #tpu.memory_space<vmem>>, %arg2: memref<1x128x32xf32, #tpu.memory_space<vmem>>, %arg3: memref<1x1x128xi32, #tpu.memory_space<vmem>>, %arg4: memref<1x8x32xf32, #tpu.memory_space<vmem>>, %arg5: memref<1x8x128xf32, #tpu.memory_space<vmem>>) attributes {dimension_semantics = [#tpu.dimension_semantics<parallel>], iteration_bounds = array<i64: 2>, scalar_prefetch = 0 : i64, scratch_operands = 0 : i64, tpu.core_type = #tpu.core_type<tc>, window_params = [{transform_indices = @transform_0, window_bounds = array<i64: 1, 8, 32>}, {transform_indices = @transform_1, window_bounds = array<i64: 1, 128, 32>}, {transform_indices = @transform_2, window_bounds = array<i64: 1, 1, 128>}, {transform_indices = @transform_3, window_bounds = array<i64: 1, 8, 32>}, {transform_indices = @transform_4, window_bounds = array<i64: 1, 8, 128>}]} {
    %c0 = arith.constant 0 : index
    %c0_0 = arith.constant 0 : index
    %c0_1 = arith.constant 0 : index
    %0 = vector.load %arg1[%c0, %c0_0, %c0_1] : memref<1x8x32xf32, #tpu.memory_space<vmem>>, vector<1x8x32xf32>
    %cst = arith.constant 0.176776692 : f32
    %1 = vector.broadcast %cst : f32 to vector<1x8x32xf32>
    %2 = arith.mulf %0, %1 : vector<1x8x32xf32>
    %c0_2 = arith.constant 0 : index
    %c0_3 = arith.constant 0 : index
    %c0_4 = arith.constant 0 : index
    %3 = vector.load %arg2[%c0_2, %c0_3, %c0_4] : memref<1x128x32xf32, #tpu.memory_space<vmem>>, vector<1x128x32xf32>
    "tpu.trace_start"() <{level = 10 : i32, message = "bqd,bkd->bqk"}> : () -> ()
    %cst_5 = arith.constant dense<0.000000e+00> : vector<1x8x128xf32>
    %4 = tpu.matmul %2, %3, %cst_5 {dimension_numbers = #tpu.dot_dimension_numbers<[2], [2], [1], [1], [0, 0, 0, 1, 1, 1], [0], [0]>} : vector<1x8x32xf32>, vector<1x128x32xf32>, vector<1x8x128xf32> -> vector<1x8x128xf32>
    "tpu.trace_stop"() : () -> ()
    %c0_6 = arith.constant 0 : index
    %c0_7 = arith.constant 0 : index
    %c0_8 = arith.constant 0 : index
    %5 = vector.load %arg3[%c0_6, %c0_7, %c0_8] : memref<1x1x128xi32, #tpu.memory_space<vmem>>, vector<1x1x128xi32>
    %c0_i32 = arith.constant 0 : i32
    %6 = vector.broadcast %c0_i32 : i32 to vector<1x1x128xi32>
    %7 = arith.cmpi eq, %5, %6 : vector<1x1x128xi32>
    %cst_9 = arith.constant -1.000000e+20 : f32
    %8 = vector.shape_cast %7 : vector<1x1x128xi1> to vector<1x1x128xi1>
    %9 = vector.broadcast %8 : vector<1x1x128xi1> to vector<1x8x128xi1>
    %10 = vector.broadcast %cst_9 : f32 to vector<1x8x128xf32>
    %11 = arith.select %9, %10, %4 : vector<1x8x128xi1>, vector<1x8x128xf32>
    %12 = tpu.iota {dimensions = array<i32: 2>} : vector<1x8x128xi32>
    %c8_i32 = arith.constant 8 : i32
    %13 = vector.broadcast %c8_i32 : i32 to vector<1x8x128xi32>
    %14 = arith.cmpi slt, %12, %13 : vector<1x8x128xi32>
    %cst_10 = arith.constant -2.000000e+20 : f32
    %15 = vector.broadcast %cst_10 : f32 to vector<1x8x128xf32>
    %16 = arith.select %14, %11, %15 : vector<1x8x128xi1>, vector<1x8x128xf32>
    %cst_11 = arith.constant dense<0xFF800000> : vector<1x8xf32>
    %17 = vector.multi_reduction <maximumf>, %16, %cst_11 [2] : vector<1x8x128xf32> to vector<1x8xf32>
    %18 = vector.shape_cast %17 : vector<1x8xf32> to vector<1x8x1xf32>
    %19 = vector.broadcast %18 : vector<1x8x1xf32> to vector<1x8x128xf32>
    %20 = arith.subf %16, %19 : vector<1x8x128xf32>
    %21 = math.exp %20 : vector<1x8x128xf32>
    %cst_12 = arith.constant dense<0.000000e+00> : vector<1x8xf32>
    %22 = vector.multi_reduction <add>, %21, %cst_12 [2] : vector<1x8x128xf32> to vector<1x8xf32>
    %23 = vector.shape_cast %22 : vector<1x8xf32> to vector<1x8x1xf32>
    %c0_13 = arith.constant 0 : index
    %c0_14 = arith.constant 0 : index
    %c0_15 = arith.constant 0 : index
    %24 = vector.load %arg2[%c0_13, %c0_14, %c0_15] : memref<1x128x32xf32, #tpu.memory_space<vmem>>, vector<1x128x32xf32>
    %25 = tpu.reciprocal %23 : vector<1x8x1xf32> -> vector<1x8x1xf32>
    %26 = vector.broadcast %25 : vector<1x8x1xf32> to vector<1x8x128xf32>
    %27 = arith.mulf %21, %26 : vector<1x8x128xf32>
    "tpu.trace_start"() <{level = 10 : i32, message = "bqk,bkd->bqd"}> : () -> ()
    %cst_16 = arith.constant dense<0.000000e+00> : vector<1x8x32xf32>
    %28 = tpu.matmul %27, %24, %cst_16 {dimension_numbers = #tpu.dot_dimension_numbers<[2], [1], [1], [2], [0, 0, 0, 1, 1, 2], [0], [0]>} : vector<1x8x128xf32>, vector<1x128x32xf32>, vector<1x8x32xf32> -> vector<1x8x32xf32>
    "tpu.trace_stop"() : () -> ()
    %c0_17 = arith.constant 0 : index
    %c0_18 = arith.constant 0 : index
    %c0_19 = arith.constant 0 : index
    %29 = vector.load %arg5[%c0_17, %c0_18, %c0_19] : memref<1x8x128xf32, #tpu.memory_space<vmem>>, vector<1x8x128xf32>
    tpu.vector_store %arg5[%c0_17, %c0_18, %c0_19], %27 {strides = array<i32>} : memref<1x8x128xf32, #tpu.memory_space<vmem>>, vector<1x8x128xf32>,
    %c0_20 = arith.constant 0 : index
    %c0_21 = arith.constant 0 : index
    %c0_22 = arith.constant 0 : index
    %30 = vector.load %arg4[%c0_20, %c0_21, %c0_22] : memref<1x8x32xf32, #tpu.memory_space<vmem>>, vector<1x8x32xf32>
    tpu.vector_store %arg4[%c0_20, %c0_21, %c0_22], %28 {strides = array<i32>} : memref<1x8x32xf32, #tpu.memory_space<vmem>>, vector<1x8x32xf32>,
    return
  }
  func.func @transform_0(%arg0: i32) -> (i32, i32, i32) {
    %c0_i32 = arith.constant 0 : i32
    %c0_i32_0 = arith.constant 0 : i32
    %c0_i32_1 = arith.constant 0 : i32
    return %arg0, %c0_i32, %c0_i32_0 : i32, i32, i32
  }
  func.func @transform_1(%arg0: i32) -> (i32, i32, i32) {
    %c0_i32 = arith.constant 0 : i32
    %c0_i32_0 = arith.constant 0 : i32
    %c0_i32_1 = arith.constant 0 : i32
    return %arg0, %c0_i32, %c0_i32_0 : i32, i32, i32
  }
  func.func @transform_2(%arg0: i32) -> (i32, i32, i32) {
    %c0_i32 = arith.constant 0 : i32
    %c0_i32_0 = arith.constant 0 : i32
    %c0_i32_1 = arith.constant 0 : i32
    return %arg0, %c0_i32, %c0_i32_0 : i32, i32, i32
  }
  func.func @transform_3(%arg0: i32) -> (i32, i32, i32) {
    %c0_i32 = arith.constant 0 : i32
    %c0_i32_0 = arith.constant 0 : i32
    %c0_i32_1 = arith.constant 0 : i32
    return %arg0, %c0_i32, %c0_i32_0 : i32, i32, i32
  }
  func.func @transform_4(%arg0: i32) -> (i32, i32, i32) {
    %c0_i32 = arith.constant 0 : i32
    %c0_i32_0 = arith.constant 0 : i32
    %c0_i32_1 = arith.constant 0 : i32
    return %arg0, %c0_i32, %c0_i32_0 : i32, i32, i32
  }
}

</mosaic_0001>

<bundles_post_ra>
// kernel: tpu_custom_call.1
= control target key start
LH: loop header
LB: loop body
LE: loop exit
PB: predicated region body
PF: predicated region fallthrough
CT: control target
= control target key end

     0   :  { %10 = vsyncpa [#allocation3], 0  ;;  %s1208_s0 = inlined_call_operand.vmem [shape: f32[2,8,32], index: 0, kind: input, shape index: {}]   ;;  %s1209_s1 = inlined_call_operand.vmem [shape: f32[2,128,32], index: 1, kind: input, shape index: {}]   ;;  %s1210_s2 = inlined_call_operand.vmem [shape: s32[2,1,128], index: 2, kind: input, shape index: {}]   ;;  %s1211_s3 = inlined_call_operand.hbm [shape: f32[2,8,32], index: 3, kind: output, shape index: {0}]   ;;  %s1212_s4 = inlined_call_operand.hbm [shape: f32[2,8,128], index: 4, kind: output, shape index: {1}]  }
   0x1   :  { %12 = vsyncpa [#allocation3 + $0x1], 0 }
   0x2   :  { %13 = vsyncpa [#allocation5], 0 }
   0x3   :  { %15 = vsyncpa [#allocation5 + $0x1], 0  ;;  %s1004_s15 = smov 0   ;;  %s1006_s16 = smov 0  }
   0x4   :  { %s1008_s17 = smov 0   ;;  %s1010_s18 = smov 0  }
   0x5 LB: > { %s1025_s19 = sadd.s32 4294967295, %s971_s18   ;;  %s632_s20 = sadd.s32 4294967294, %s971_s18   ;;  %s971_s18 = sphi %s1010_s18, %s1220_s18   ;;  %s967_s17 = sphi %s1008_s17, %s1219_s17   ;;  %s963_s16 = sphi %s1006_s16, %s1218_s16   ;;  %s959_s15 = sphi %s1004_s15, %s1217_s15  }
   0x6   : > { %s1029_s21 = sadd.s32 1, %s971_s18   ;;  %s106_s22 = sadd.s32 1, %s967_s17 }
   0x7   : > { %s103_s23 = ssub.s32 %s971_s18, %s1029_s21  ;;  %p116_p0 = scmp.ne.s32.totalorder %s967_s17, %s963_s16 }
   0x8   : > { %p104_p1 = scmp.eq.s32.totalorder %s103_s23, 0  ;;  %p117_p2 = scmp.eq.s32.totalorder %s1025_s19, 1 }
   0x9   : > { %p122_p3 = scmp.ne.s32.totalorder %s963_s16, %s959_s15  ;;  %p123_p4 = scmp.eq.s32.totalorder %s632_s20, 1 }
   0xa   : > { %s1040_s24 = scalar_select %p104_p1, %s967_s17, %s106_s22  }
   0xb   : > { %p1042_p5 = por %p117_p2, %p116_p0  ;;  %p1046_p6 = por %p123_p4, %p122_p3 }
   0xc   : > { %p635_p7 = scmp.ge.s32.totalorder %s971_s18, 1  ;;  %p188_p8 = scmp.lt.s32.totalorder %s971_s18, 3 }
   0xe   : > { %p189_p9 = pnand %p635_p7, %p188_p8 }
   0xf   : > { %p226_p10 = scmp.lt.s32.totalorder (!%p189_p9), %s1025_s19, 1  ;;  %v973_v0 = vmov (!%p189_p9), 0.0|0.0   ;;  %vm974_vm0 = vmmov (!%p189_p9), 0   ;;  %v975_v1 = vmov (!%p189_p9), 0.0   ;;  %vm256_vm1 = vcmask (!%p189_p9), 261120   ;;  %s1126_s13 = sand.u32 (!%p189_p9), 1, %s963_s16  }
  0x10   : > { %192 = sbr.rel (%p189_p9) target bundleno = 845 (0x34d), region = 32  ;;  %769 = vmatprep.subr.bf16.mxu0 (!%p189_p9), %v973_v0  ;;  %731 = vmatprep.mubr.msk.f32.mxu0 (!%p189_p9), %vm974_vm0, %v975_v1  ;;  %vm1068_vm2 = vmpackc.low (!%p189_p9), %vm256_vm1, %vm256_vm1  ;;  %v381_v29 = vlaneseq (!%p189_p9)  ;;  %v976_v33 = vmov (!%p189_p9), 0   ;;  %s636_s14 = sshll.u32 (!%p189_p9), %s1126_s13, 3 }
  0x11   : > { %801 = vmatprep.subr.bf16.mxu1 (!%p189_p9), %v973_v0  ;;  %766 = vmatprep.mubr.msk.f32.mxu1 (!%p189_p9), %vm974_vm0, %v975_v1  ;;  %s225_s20 = scalar_lea.vmem (!%p189_p9), [#allocation4], %s636_s14  ;;  %s660_s22 = sshll.u32 (!%p189_p9), %s1025_s19, 7 }
  0x12   : > { %v382_v31 = vshrl.u32 (!%p189_p9), %v381_v29, 7  ;;  %v388_v36 = vand.u32 (!%p189_p9), 127, %v381_v29  ;;  %s520_s29 = sshll.u32 (!%p189_p9), %s225_s20, 4  ;;  %s494_s30 = scalar_lea.sflag (!%p189_p9), [#allocation5], %s1126_s13  ;;  %s521_s29 = int_to_ptr.vmem [resolvable:$true] %s520_s29 }
  0x14   : > { %v383_v32 = vsub.s32 (!%p189_p9), 0, %v382_v31  ;;  %vm389_vm5 = vcmp.lt.s32.totalorder (!%p189_p9), %v388_v36, 8 }
  0x17   : > { %s1055_s27 = scalar_select %p226_p10, %s1025_s19, 1 }
  0x19   : > { %s664_s28 = sshll.u32 %s1055_s27, 7  ;;  %s638_s6 = sshll.u32 %s1055_s27, 3 }
  0x1a   : > { %s1062_s5 = scalar_lea.vmem %s1209_s1, %s664_s28  ;;  %s229_s9 = scalar_lea.vmem %s1208_s0, %s638_s6 }
  0x1b   : > { %v240_v2 = vld [vmem:[%s1062_s5] sm:$0xff]  ;;  %v241_v3 = vld [vmem:[%s1062_s5 + $0x8] sm:$0xff]  ;;  %v242_v6 = vld [vmem:[%s1062_s5 + $0x10] sm:$0xff]  ;;  %s237_s12 = scalar_lea.vmem %s1210_s2, %s1055_s27  ;;  %s1137_s28 = scalar_lea.hbm %s1212_s4, %s660_s22 }
  0x1c   : > { %v770_v5 = vpack.c.bf16 %v241_v3, %v240_v2  ;;  %v243_v7 = vld [vmem:[%s1062_s5 + $0x18] sm:$0xff]  ;;  %v244_v9 = vld [vmem:[%s1062_s5 + $0x20] sm:$0xff]  ;;  %v245_v10 = vld [vmem:[%s1062_s5 + $0x28] sm:$0xff]  ;;  %s977_s6 = smov [#allocation4]  }
  0x1d   : > { %v774_v8 = vpack.c.bf16 %v243_v7, %v242_v6  ;;  %v778_v11 = vpack.c.bf16 %v245_v10, %v244_v9  ;;  %v246_v12 = vld [vmem:[%s1062_s5 + $0x30] sm:$0xff]  ;;  %v247_v13 = vld [vmem:[%s1062_s5 + $0x38] sm:$0xff]  ;;  %v248_v15 = vld [vmem:[%s1062_s5 + $0x40] sm:$0xff]  ;;  %s881_s7 = sshll.u32 %s977_s6, 4  ;;  %s882_s7 = int_to_ptr.vmem [resolvable:$false] %s881_s7 }
  0x1e   : > { %772 = vmatpush3.bf16.xpose.msk.msra.mxu0 %vm1068_vm2, %v770_v5  ;;  %803 = vmatpush3.bf16.msra.mxu1 %v770_v5  ;;  %v782_v14 = vpack.c.bf16 %v247_v13, %v246_v12  ;;  %v249_v16 = vld [vmem:[%s1062_s5 + $0x48] sm:$0xff]  ;;  %v250_v18 = vld [vmem:[%s1062_s5 + $0x50] sm:$0xff]  ;;  %v251_v19 = vld [vmem:[%s1062_s5 + $0x58] sm:$0xff]  ;;  %s883_s8 = scalar_lea.vmem %s882_s7, 256  ;;  %p884_p0 = scmp.lt.s32.totalorder %s521_s29, %s882_s7 }
  0x1f   : > { %773 = vmatprep.subr.bf16.mxu0 %v973_v0  ;;  %804 = vmatprep.subr.bf16.mxu1 %v973_v0  ;;  %v786_v17 = vpack.c.bf16 %v249_v16, %v248_v15  ;;  %v790_v20 = vpack.c.bf16 %v251_v19, %v250_v18  ;;  %v252_v21 = vld [vmem:[%s1062_s5 + $0x60] sm:$0xff]  ;;  %v253_v22 = vld [vmem:[%s1062_s5 + $0x68] sm:$0xff]  ;;  %v254_v24 = vld [vmem:[%s1062_s5 + $0x70] sm:$0xff] }
  0x20   : > { %v794_v23 = vpack.c.bf16 %v253_v22, %v252_v21  ;;  %v255_v25 = vld [vmem:[%s1062_s5 + $0x78] sm:$0xff]  ;;  %v238_v27 = vld [vmem:[%s229_s9] sm:$0xff]  ;;  %s877_s5 = scalar_lea.vmem %s521_s29, 128 }
  0x21   : > { %v798_v26 = vpack.c.bf16 %v255_v25, %v254_v24  ;;  %v239_v28 = vmul.f32 0.17677669, %v238_v27  ;;  %v378_v30 = vld [vmem:[%s237_s12] sm:$0x1]  ;;  %p878_p11 = scmp.ne.s32.totalorder %s521_s29, %s877_s5  ;;  %p885_p1 = scmp.lt.s32.totalorder %s883_s8, %s877_s5 }
  0x22   : > { %806 = vmatpush3.bf16.msra.mxu1 %v774_v8  ;;  %vm379_vm3 = vcmp.eq.s32.totalorder %v378_v30, 0 }
  0x23   : > { %807 = vmatprep.subr.bf16.mxu1 %v973_v0  ;;  %v380_v34 = vsel %vm379_vm3, 1, %v976_v33  ;;  %p879_p12 = pnand %p878_p11, %p1042_p5  ;;  %p886_p2 = por %p885_p1, %p884_p0 }
  0x24   : > { %v384_v35 = vrot.slane %v380_v34, %v383_v32 }
  0x25   : > { %p880_p13 = pneg %p879_p12 }
  0x26   : > { %776 = vmatpush3.bf16.xpose.msk.msra.mxu0 %vm1068_vm2, %v774_v8  ;;  %809 = vmatpush3.bf16.msra.mxu1 %v778_v11  ;;  %vm385_vm4 = vcmp.eq.s32.totalorder %v384_v35, 1 }
  0x27   : > { %777 = vmatprep.subr.bf16.mxu0 %v973_v0  ;;  %810 = vmatprep.subr.bf16.mxu1 %v973_v0  ;;  %p887_p3 = pnand %p886_p2, %p880_p13 }
  0x2a   : > { %812 = vmatpush3.bf16.msra.mxu1 %v782_v14 }
  0x2b   : > { %813 = vmatprep.subr.bf16.mxu1 %v973_v0 }
  0x2e   : > { %780 = vmatpush3.bf16.xpose.msk.msra.mxu0 %vm1068_vm2, %v778_v11  ;;  %815 = vmatpush3.bf16.msra.mxu1 %v786_v17 }
  0x2f   : > { %781 = vmatprep.subr.bf16.mxu0 %v973_v0  ;;  %816 = vmatprep.subr.bf16.mxu1 %v973_v0 }
  0x32   : > { %818 = vmatpush3.bf16.msra.mxu1 %v790_v20 }
  0x33   : > { %819 = vmatprep.subr.bf16.mxu1 %v973_v0 }
  0x36   : > { %784 = vmatpush3.bf16.xpose.msk.msra.mxu0 %vm1068_vm2, %v782_v14  ;;  %821 = vmatpush3.bf16.msra.mxu1 %v794_v23 }
  0x37   : > { %785 = vmatprep.subr.bf16.mxu0 %v973_v0  ;;  %822 = vmatprep.subr.bf16.mxu1 %v973_v0 }
  0x3a   : > { %824 = vmatpush3.bf16.msra.mxu1 %v798_v26 }
  0x3e   : > { %788 = vmatpush3.bf16.xpose.msk.msra.mxu0 %vm1068_vm2, %v786_v17 }
  0x3f   : > { %789 = vmatprep.subr.bf16.mxu0 %v973_v0 }
  0x46   : > { %792 = vmatpush3.bf16.xpose.msk.msra.mxu0 %vm1068_vm2, %v790_v20 }
  0x47   : > { %793 = vmatprep.subr.bf16.mxu0 %v973_v0 }
  0x4e   : > { %796 = vmatpush3.bf16.xpose.msk.msra.mxu0 %vm1068_vm2, %v794_v23 }
  0x4f   : > { %797 = vmatprep.subr.bf16.mxu0 %v973_v0 }
  0x56   : > { %800 = vmatpush3.bf16.xpose.msk.msra.mxu0 %vm1068_vm2, %v798_v26 }
  0x5d   : > { %732 = vmatmul.mubr.msk.f32.vlgmr.msra.gmra.mrb[0].mxu0 %vm256_vm1, %v239_v28 }
 0x130   : > { %v374_v37 = vpop.f32.mrb[0].mxu0 }
 0x131   : > { %v386_v38 = vsel %vm385_vm4, -1e+20, %v374_v37  ;;  %v733_v39 = vpop.f32.mrb[1].mxu0 }
 0x132   : > { %v390_v40 = vsel %vm389_vm5, %v386_v38, -2e+20 }
 0x133   : > { %391 = vmax.xlane.f32.xlu0 %v390_v40 }
 0x1c0   : > { %v392_v41 = vpop.xlane.xlu0 %391 }
 0x1c1   : > { %v393_v42 = vsub.f32 %v390_v40, %v392_v41 }
 0x1c3   : > { %v394_v43 = vmul.f32 1.442695, %v393_v42 }
 0x1c5   : > { %873 = vpow2.f32 %v394_v43 }
 0x1cf   : > { %v874_v44 = vpop.eup %873 }
 0x1d0   : > { %396 = vadd.xlane.f32.xlu0 %v874_v44 }
 0x25d   : > { %v397_v45 = vpop.xlane.xlu0 %396 }
 0x25e   : > { %875 = vrcp.f32 %v397_v45 }
 0x268   : > { %v876_v46 = vpop.eup %875 }
 0x269   : > { %v415_v47 = vmul.f32 %v876_v46, %v874_v44 }
 0x26b   : > { %767 = vmatmul.mubr.f32.vlgmr.msra.gmra.mrb[0].mxu1 %v415_v47  ;;  %486 = vst [vmem:[%s225_s20] sm:$0xff] %v415_v47 }
 0x26c   : > { %890 = shalt.err (!%p887_p3)
}
 0x26d   : > { %s891_s9 = scalar_lea.hbm %s1137_s28, 128  ;;  %s895_s12 = scalar_lea.hbm %s1212_s4, 256 }
 0x26e   : > { %p892_p4 = scmp.ne.s32.totalorder %s1137_s28, %s891_s9  ;;  %p896_p9 = scmp.lt.u32.totalorder %s1137_s28, %s1212_s4 }
 0x26f   : > { %p897_p10 = scmp.lt.u32.totalorder %s895_s12, %s891_s9  ;;  %p899_p12 = scmp.lt.u32.totalorder %s891_s9, %s1137_s28 }
 0x270   : > { %p893_p7 = pnand %p892_p4, %p1042_p5 }
 0x271   : > { %p898_p11 = por %p897_p10, %p896_p9 }
 0x272   : > { %p894_p8 = pneg %p893_p7 }
 0x273   : > { %p900_p13 = por %p899_p12, %p898_p11 }
 0x275   : > { %p901_p0 = pnand %p900_p13, %p894_p8 }
 0x277   : > { %904 = shalt.err (!%p901_p0)
}
 0x278   : > { %826 = dma.vmem_to_hbm [thread:$0]  (%p1042_p5), %s521_s29, 128, %s1137_s28, %s494_s30  }
 0x279   : > { %s218_s27 = scalar_lea.vmem [#allocation2], %s636_s14  ;;  %s1164_s8 = scalar_lea.hbm %s1211_s3, %s660_s22 }
 0x27a   : > { %s507_s5 = sshll.u32 %s218_s27, 4  ;;  %s489_s9 = scalar_lea.sflag [#allocation3], %s1126_s13  ;;  %s1166_s5 = int_to_ptr.vmem [resolvable:$true] %s507_s5 }
 0x27b   : > { %s905_s28 = scalar_lea.vmem %s1166_s5, 128  ;;  %s978_s19 = smov [#allocation2]  }
 0x27c   : > { %p906_p1 = scmp.ne.s32.totalorder %s1166_s5, %s905_s28  ;;  %s909_s14 = sshll.u32 %s978_s19, 4  ;;  %s910_s14 = int_to_ptr.vmem [resolvable:$false] %s909_s14 }
 0x27d   : > { %s911_s22 = scalar_lea.vmem %s910_s14, 256  ;;  %p912_p4 = scmp.lt.s32.totalorder %s1166_s5, %s910_s14 }
 0x27e   : > { %p907_p2 = pnand %p906_p1, %p1042_p5  ;;  %p913_p7 = scmp.lt.s32.totalorder %s911_s22, %s905_s28 }
 0x280   : > { %p908_p3 = pneg %p907_p2  ;;  %p914_p8 = por %p913_p7, %p912_p4 }
 0x282   : > { %p915_p9 = pnand %p914_p8, %p908_p3 }
 0x33e   : > { %v482_v48 = vpop.f32.mrb[0].mxu1 }
 0x33f   : > { %487 = vst.msk [vmem:[%s218_s27] sm:$0xff] %vm256_vm1, %v482_v48  ;;  %v768_v49 = vpop.f32.mrb[1].mxu1 }
 0x340   : > { %918 = shalt.err (!%p915_p9)
}
 0x341   : > { %s919_s13 = scalar_lea.hbm %s1164_s8, 128  ;;  %s923_s10 = scalar_lea.hbm %s1211_s3, 256 }
 0x342   : > { %p920_p10 = scmp.ne.s32.totalorder %s1164_s8, %s919_s13  ;;  %p924_p13 = scmp.lt.u32.totalorder %s1164_s8, %s1211_s3 }
 0x343   : > { %p925_p0 = scmp.lt.u32.totalorder %s923_s10, %s919_s13  ;;  %p927_p2 = scmp.lt.u32.totalorder %s919_s13, %s1164_s8 }
 0x344   : > { %p921_p11 = pnand %p920_p10, %p1042_p5 }
 0x345   : > { %p926_p1 = por %p925_p0, %p924_p13 }
 0x346   : > { %p922_p12 = pneg %p921_p11 }
 0x347   : > { %p928_p3 = por %p927_p2, %p926_p1 }
 0x349   : > { %p929_p4 = pnand %p928_p3, %p922_p12 }
 0x34b   : > { %932 = shalt.err (!%p929_p4)
}
 0x34c   : > { %825 = dma.vmem_to_hbm [thread:$0]  (%p1042_p5), %s1166_s5, 128, %s1164_s8, %s489_s9  }
 0x34d PF: > { %p836_p7 = scmp.ge.s32.totalorder %s971_s18, 2  ;;  %s532_s20 = sand.u32 1, %s959_s15  }
 0x34e   : > { %s533_s23 = scalar_lea.sflag [#allocation3], %s532_s20 }
 0x34f   : > { %p830_p8 = pnand %p836_p7, %p1046_p6 }
 0x351   : > { %950 = dma.done.wait (!%p830_p8), %s533_s23, 128  }
 0x352   : > { %952 = vsyncadd (!%p830_p8), %s533_s23, 4294967168  ;;  %s542_s27 = scalar_lea.sflag [#allocation5], %s532_s20 }
 0x353   : > { %954 = dma.done.wait (!%p830_p8), %s542_s27, 128  }
 0x354   : > { %956 = vsyncadd (!%p830_p8), %s542_s27, 4294967168  ;;  %p18_p5 = scmp.ge.s32.totalorder %s1029_s21, 4   ;;  %s1217_s15 = smov %s963_s16 }
 0x355   : > { %s1218_s16 = smov %s967_s17  ;;  %s1219_s17 = smov %s1040_s24 }
 0x356   : > { %s1220_s18 = smov %s1029_s21  ;;  %20 = sbr.rel (!%p18_p5) target bundleno = 5 (0x5), region = 90 }
 0x35d   :  { %547 = vsyncpa [#allocation3], 1 }
 0x35e   :  { %549 = vsyncpa [#allocation3 + $0x1], 1 }
 0x35f   :  { %550 = vsyncpa [#allocation5], 1 }
 0x360   :  { %552 = vsyncpa [#allocation5 + $0x1], 1 }

</bundles_post_ra>
